<compile_context>
chip_gen: v5e
topology: v5e:2x2
jax: 0.10.0
libtpu: 0.0.40
codegen_flags: <defaults>
</compile_context>

<pallas_src>
import jax
import jax.numpy as jnp
from jax.experimental import pallas as pl
from jax.experimental.pallas import tpu as pltpu


# ------------------------------- Pallas kernel ------------------------------

def _make_kernel(sps, K, C_in, C_out, Hout, Wout, Wp, groups, act_norm, eps):
    """Kernel factory. One grid step processes `sps` samples.

    Layout inside the kernel (all lane-dense):
      x_ref : (sps, C_in, Lin)   bf16  flat circularly padded sample(s)
      w_ref : (K*K, C_out, C_in) bf16  per-tap weights (resident)
      b_ref : (C_out, 1) f32 bias,  m_ref: (1, HWc) valid-column mask
      g_ref/be_ref: (C_out, 1) f32 GroupNorm affine
      o_ref : (sps, C_out, HWc) f32 output canvas (cols w < Wout are valid)
    """
    HWc = Hout * Wp                      # canvas length, spatial on lanes
    gs = C_out // groups
    inv_cnt = 1.0 / float(gs * Hout * Wout)

    def kernel(x_ref, w_ref, b_ref, m_ref, g_ref, be_ref, o_ref):
        m = m_ref[...]                                       # (1, HWc)
        rows = (jax.lax.broadcasted_iota(jnp.int32, (C_out, 1), 0)
                if act_norm else None)

        for s in range(sps):                                 # static unroll
            # conv = bias + sum over K*K taps of (C_out,C_in)@(C_in,HWc) MXU
            # matmuls; each shifted view is a static lane slice of the slab.
            acc = jnp.broadcast_to(b_ref[...], (C_out, HWc))  # f32, bias folded
            for kh in range(K):
                for kw in range(K):
                    off = kh * Wp + kw
                    xs = x_ref[s, :, off:off + HWc]          # (C_in, HWc) bf16
                    wt = w_ref[kh * K + kw]                  # (C_out, C_in) bf16
                    acc = acc + jnp.dot(
                        wt, xs, preferred_element_type=jnp.float32)

            if not act_norm:
                o_ref[s] = acc.astype(o_ref.dtype)
                continue

            # GroupNorm(groups, C_out) + SiLU. Two-pass masked stats per group
            # (valid columns only), folded into per-channel scale/shift so the
            # normalize+activate+store is ONE full-tile pass.
            ym = acc * m                                     # masked once
            scale = jnp.zeros((C_out, 1), jnp.float32)
            shift = jnp.zeros((C_out, 1), jnp.float32)
            for g in range(groups):
                r0, r1 = g * gs, (g + 1) * gs
                yg = acc[r0:r1, :]                            # (gs, HWc)
                mean = jnp.sum(jnp.sum(ym[r0:r1, :], axis=1, keepdims=True),
                               axis=0, keepdims=True) * inv_cnt        # (1,1)
                d = (yg - mean) * m
                var = jnp.sum(jnp.sum(d * d, axis=1, keepdims=True),
                              axis=0, keepdims=True) * inv_cnt          # (1,1)
                inv_std = jax.lax.rsqrt(var + eps)                       # (1,1)
                sel = jnp.logical_and(rows >= r0, rows < r1)       # (C_out,1)
                scale = jnp.where(sel, inv_std, scale)
                shift = jnp.where(sel, -mean * inv_std, shift)

            # z = (y - mean) * inv_std * gamma + beta, per channel.
            z = acc * (scale * g_ref[...]) + (shift * g_ref[...] + be_ref[...])
            silu = z * pl.reciprocal(1.0 + jnp.exp(-z), approx=True)
            o_ref[s] = silu.astype(o_ref.dtype)

    return kernel


# --------------------------------- wrapper ----------------------------------

def basic_conv2d_forward(x, params, *, padding=1, act_norm=True, groups=2,
                         eps=1e-5, samples_per_step=1):
    """BasicConv2d forward (stride=1, circular pad) as one Pallas TPU kernel.

    x: (N, C_in, H, W) f32. params: w (C_out,C_in,K,K), b (C_out,),
    gn_w/gn_b (C_out,) if act_norm. Returns (N, C_out, Hout, Wout) f32.
    """
    w, b = params["w"], params["b"]
    C_out, C_in, K, K2 = w.shape
    N, Cx, H, W = x.shape
    assert K == K2 and Cx == C_in
    assert C_out % groups == 0
    assert N % samples_per_step == 0
    sps = samples_per_step
    p = int(padding)

    Hp, Wp = H + 2 * p, W + 2 * p
    Hout, Wout = Hp - K + 1, Wp - K + 1
    assert Hout > 0 and Wout > 0
    HWc = Hout * Wp                       # output canvas (valid cols: w < Wout)
    Lin = Hp * Wp + (K - 1)               # flat padded input length (+ slack)

    # Circular pad ONCE (~(Hp*Wp)/(H*W) HBM expansion, not K*K), flatten
    # channel-major (NCHW is already channels-major -> no transpose), bf16.
    xp = x
    if p > 0:
        xp = jnp.pad(x, ((0, 0), (0, 0), (p, p), (p, p)), mode="wrap")
    xpf = xp.reshape(N, C_in, Hp * Wp)
    xpf = jnp.pad(xpf, ((0, 0), (0, 0), (0, Lin - Hp * Wp)))
    xpf = xpf.astype(jnp.bfloat16)

    # Per-tap weights (K*K, C_out, C_in), bf16 for the MXU.
    wtap = jnp.transpose(w, (2, 3, 0, 1)).reshape(K * K, C_out, C_in)
    wtap = wtap.astype(jnp.bfloat16)
    bias = b.reshape(C_out, 1).astype(jnp.float32)

    # Canvas-column validity mask (1.0 where the lane is a real output col).
    mask = ((jnp.arange(HWc) % Wp) < Wout).astype(jnp.float32).reshape(1, HWc)

    if act_norm:
        gamma = params["gn_w"].reshape(C_out, 1).astype(jnp.float32)
        beta = params["gn_b"].reshape(C_out, 1).astype(jnp.float32)
    else:
        gamma = jnp.ones((C_out, 1), jnp.float32)
        beta = jnp.zeros((C_out, 1), jnp.float32)

    kernel = _make_kernel(sps, K, C_in, C_out, Hout, Wout, Wp,
                          groups, act_norm, eps)

    out_canvas = pl.pallas_call(
        kernel,
        out_shape=jax.ShapeDtypeStruct((N, C_out, HWc), jnp.float32),
        grid=(N // sps,),
        in_specs=[
            pl.BlockSpec((sps, C_in, Lin), lambda n: (n, 0, 0)),       # samples
            pl.BlockSpec((K * K, C_out, C_in), lambda n: (0, 0, 0)),   # weights (resident)
            pl.BlockSpec((C_out, 1), lambda n: (0, 0)),                # bias
            pl.BlockSpec((1, HWc), lambda n: (0, 0)),                  # mask
            pl.BlockSpec((C_out, 1), lambda n: (0, 0)),                # gamma
            pl.BlockSpec((C_out, 1), lambda n: (0, 0)),                # beta
        ],
        out_specs=pl.BlockSpec((sps, C_out, HWc), lambda n: (n, 0, 0)),
        compiler_params=pltpu.CompilerParams(
            dimension_semantics=("parallel",),         # megacore / 2 TCs on v7x
            vmem_limit_bytes=32 * 1024 * 1024,         # tiny here; re-derive for large shapes (v7x: 64 MiB VMEM)
        ),
    )(xpf, wtap, bias, mask, gamma, beta)

    # Drop the (Wp - Wout) pad columns of the canvas -> NCHW (no transpose).
    return out_canvas.reshape(N, C_out, Hout, Wp)[..., :Wout]


# ----------------------- plain-JAX reference (for check) --------------------

def basic_conv2d_reference(x, params, *, padding=1, act_norm=True, groups=2,
                           eps=1e-5):
    w, b = params["w"], params["b"]
    xp = x
    if padding > 0:
        xp = jnp.pad(x, ((0, 0), (0, 0), (padding, padding), (padding, padding)),
                     mode="wrap")
    y = jax.lax.conv_general_dilated(xp, w, (1, 1), "VALID",
                                     dimension_numbers=("NCHW", "OIHW", "NCHW"))
    y = y + b[None, :, None, None]
    if act_norm:
        N, C, Hh, Ww = y.shape
        yg = y.reshape(N, groups, C // groups, Hh, Ww)
        mu = jnp.mean(yg, axis=(2, 3, 4), keepdims=True)
        var = jnp.mean(jnp.square(yg - mu), axis=(2, 3, 4), keepdims=True)
        yn = ((yg - mu) * jax.lax.rsqrt(var + eps)).reshape(N, C, Hh, Ww)
        y = yn * params["gn_w"][None, :, None, None] + params["gn_b"][None, :, None, None]
        y = y * jax.nn.sigmoid(y)
    return y


# ----------------------------------- main ------------------------------------

if __name__ == "__main__":
    N, C_in, C_out, H, W, K = 2, 4, 8, 16, 16, 3
    key = jax.random.PRNGKey(0)
    ks = jax.random.split(key, 6)

    def trunc(k, shape, std=0.02):
        return std * jax.random.truncated_normal(k, -2.0, 2.0, shape, jnp.float32)

    params = {
        "w": trunc(ks[0], (C_out, C_in, K, K)),
        "b": 0.1 * jax.random.normal(ks[1], (C_out,), jnp.float32),
        "gn_w": 1.0 + 0.1 * jax.random.normal(ks[2], (C_out,), jnp.float32),
        "gn_b": 0.1 * jax.random.normal(ks[3], (C_out,), jnp.float32),
    }
    x = jax.random.normal(ks[4], (N, C_in, H, W), jnp.float32)

    # act_norm=True path: circular conv + GroupNorm(2) + SiLU (bf16 streams).
    out = jax.block_until_ready(
        basic_conv2d_forward(x, params, padding=K // 2, act_norm=True))
    assert out.shape == (N, C_out, H, W)
    ref = jax.block_until_ready(
        basic_conv2d_reference(x, params, padding=K // 2, act_norm=True))
    err = float(jnp.max(jnp.abs(out - ref)))
    assert err < 5e-2, f"act_norm=True max abs err {err}"

    # act_norm=False path: plain circular conv + bias.
    out2 = jax.block_until_ready(
        basic_conv2d_forward(x, params, padding=K // 2, act_norm=False))
    ref2 = jax.block_until_ready(
        basic_conv2d_reference(x, params, padding=K // 2, act_norm=False))
    err2 = float(jnp.max(jnp.abs(out2 - ref2)))
    assert out2.shape == (N, C_out, H, W)
    assert err2 < 1e-2, f"act_norm=False max abs err {err2}"

    print("KERNEL_OK")
</pallas_src>

<mosaic_0001>
module attributes {stable_mosaic.version = 11 : i64} {
  func.func @kernel(%arg0: i32, %arg1: memref<1x4x326xbf16, #tpu.memory_space<vmem>>, %arg2: memref<9x8x4xbf16, #tpu.memory_space<vmem>>, %arg3: memref<8x1xf32, #tpu.memory_space<vmem>>, %arg4: memref<1x288xf32, #tpu.memory_space<vmem>>, %arg5: memref<8x1xf32, #tpu.memory_space<vmem>>, %arg6: memref<8x1xf32, #tpu.memory_space<vmem>>, %arg7: memref<1x8x288xf32, #tpu.memory_space<vmem>>) attributes {dimension_semantics = [#tpu.dimension_semantics<parallel>], iteration_bounds = array<i64: 2>, scalar_prefetch = 0 : i64, scratch_operands = 0 : i64, tpu.core_type = #tpu.core_type<tc>, window_params = [{transform_indices = @transform_0, window_bounds = array<i64: 1, 4, 326>}, {pipeline_mode = #tpu.pipeline_mode<synchronous>, transform_indices = @transform_1, window_bounds = array<i64: 9, 8, 4>}, {pipeline_mode = #tpu.pipeline_mode<synchronous>, transform_indices = @transform_2, window_bounds = array<i64: 8, 1>}, {pipeline_mode = #tpu.pipeline_mode<synchronous>, transform_indices = @transform_3, window_bounds = array<i64: 1, 288>}, {pipeline_mode = #tpu.pipeline_mode<synchronous>, transform_indices = @transform_4, window_bounds = array<i64: 8, 1>}, {pipeline_mode = #tpu.pipeline_mode<synchronous>, transform_indices = @transform_5, window_bounds = array<i64: 8, 1>}, {transform_indices = @transform_6, window_bounds = array<i64: 1, 8, 288>}]} {
    %c0 = arith.constant 0 : index
    %c0_0 = arith.constant 0 : index
    %0 = vector.load %arg4[%c0, %c0_0] : memref<1x288xf32, #tpu.memory_space<vmem>>, vector<1x288xf32>
    %1 = tpu.iota {dimensions = array<i32: 0>} : vector<8x1xi32>
    %c0_1 = arith.constant 0 : index
    %c0_2 = arith.constant 0 : index
    %2 = vector.load %arg3[%c0_1, %c0_2] : memref<8x1xf32, #tpu.memory_space<vmem>>, vector<8x1xf32>
    %3 = vector.shape_cast %2 : vector<8x1xf32> to vector<8x1xf32>
    %4 = vector.broadcast %3 : vector<8x1xf32> to vector<8x288xf32>
    %c0_3 = arith.constant 0 : index
    %c0_4 = arith.constant 0 : index
    %c0_5 = arith.constant 0 : index
    %5 = vector.load %arg1[%c0_3, %c0_4, %c0_5] : memref<1x4x326xbf16, #tpu.memory_space<vmem>>, vector<1x4x288xbf16>
    %6 = vector.shape_cast %5 : vector<1x4x288xbf16> to vector<4x288xbf16>
    %c0_6 = arith.constant 0 : index
    %c0_7 = arith.constant 0 : index
    %c0_8 = arith.constant 0 : index
    %7 = vector.load %arg2[%c0_6, %c0_7, %c0_8] : memref<9x8x4xbf16, #tpu.memory_space<vmem>>, vector<1x8x4xbf16>
    %8 = vector.shape_cast %7 : vector<1x8x4xbf16> to vector<8x4xbf16>
    %cst = arith.constant dense<0.000000e+00> : vector<8x288xf32>
    %9 = tpu.matmul %8, %6, %cst {dimension_numbers = #tpu.dot_dimension_numbers<[1], [0], [0], [1], [0, 0, 1, 1], [], []>} : vector<8x4xbf16>, vector<4x288xbf16>, vector<8x288xf32> -> vector<8x288xf32>
    %10 = arith.addf %4, %9 : vector<8x288xf32>
    %c0_9 = arith.constant 0 : index
    %c0_10 = arith.constant 0 : index
    %c1 = arith.constant 1 : index
    %11 = vector.load %arg1[%c0_9, %c0_10, %c1] : memref<1x4x326xbf16, #tpu.memory_space<vmem>>, vector<1x4x288xbf16>
    %12 = vector.shape_cast %11 : vector<1x4x288xbf16> to vector<4x288xbf16>
    %c1_11 = arith.constant 1 : index
    %c0_12 = arith.constant 0 : index
    %c0_13 = arith.constant 0 : index
    %13 = vector.load %arg2[%c1_11, %c0_12, %c0_13] : memref<9x8x4xbf16, #tpu.memory_space<vmem>>, vector<1x8x4xbf16>
    %14 = vector.shape_cast %13 : vector<1x8x4xbf16> to vector<8x4xbf16>
    %cst_14 = arith.constant dense<0.000000e+00> : vector<8x288xf32>
    %15 = tpu.matmul %14, %12, %cst_14 {dimension_numbers = #tpu.dot_dimension_numbers<[1], [0], [0], [1], [0, 0, 1, 1], [], []>} : vector<8x4xbf16>, vector<4x288xbf16>, vector<8x288xf32> -> vector<8x288xf32>
    %16 = arith.addf %10, %15 : vector<8x288xf32>
    %c0_15 = arith.constant 0 : index
    %c0_16 = arith.constant 0 : index
    %c2 = arith.constant 2 : index
    %17 = vector.load %arg1[%c0_15, %c0_16, %c2] : memref<1x4x326xbf16, #tpu.memory_space<vmem>>, vector<1x4x288xbf16>
    %18 = vector.shape_cast %17 : vector<1x4x288xbf16> to vector<4x288xbf16>
    %c2_17 = arith.constant 2 : index
    %c0_18 = arith.constant 0 : index
    %c0_19 = arith.constant 0 : index
    %19 = vector.load %arg2[%c2_17, %c0_18, %c0_19] : memref<9x8x4xbf16, #tpu.memory_space<vmem>>, vector<1x8x4xbf16>
    %20 = vector.shape_cast %19 : vector<1x8x4xbf16> to vector<8x4xbf16>
    %cst_20 = arith.constant dense<0.000000e+00> : vector<8x288xf32>
    %21 = tpu.matmul %20, %18, %cst_20 {dimension_numbers = #tpu.dot_dimension_numbers<[1], [0], [0], [1], [0, 0, 1, 1], [], []>} : vector<8x4xbf16>, vector<4x288xbf16>, vector<8x288xf32> -> vector<8x288xf32>
    %22 = arith.addf %16, %21 : vector<8x288xf32>
    %c0_21 = arith.constant 0 : index
    %c0_22 = arith.constant 0 : index
    %c18 = arith.constant 18 : index
    %23 = vector.load %arg1[%c0_21, %c0_22, %c18] : memref<1x4x326xbf16, #tpu.memory_space<vmem>>, vector<1x4x288xbf16>
    %24 = vector.shape_cast %23 : vector<1x4x288xbf16> to vector<4x288xbf16>
    %c3 = arith.constant 3 : index
    %c0_23 = arith.constant 0 : index
    %c0_24 = arith.constant 0 : index
    %25 = vector.load %arg2[%c3, %c0_23, %c0_24] : memref<9x8x4xbf16, #tpu.memory_space<vmem>>, vector<1x8x4xbf16>
    %26 = vector.shape_cast %25 : vector<1x8x4xbf16> to vector<8x4xbf16>
    %cst_25 = arith.constant dense<0.000000e+00> : vector<8x288xf32>
    %27 = tpu.matmul %26, %24, %cst_25 {dimension_numbers = #tpu.dot_dimension_numbers<[1], [0], [0], [1], [0, 0, 1, 1], [], []>} : vector<8x4xbf16>, vector<4x288xbf16>, vector<8x288xf32> -> vector<8x288xf32>
    %28 = arith.addf %22, %27 : vector<8x288xf32>
    %c0_26 = arith.constant 0 : index
    %c0_27 = arith.constant 0 : index
    %c19 = arith.constant 19 : index
    %29 = vector.load %arg1[%c0_26, %c0_27, %c19] : memref<1x4x326xbf16, #tpu.memory_space<vmem>>, vector<1x4x288xbf16>
    %30 = vector.shape_cast %29 : vector<1x4x288xbf16> to vector<4x288xbf16>
    %c4 = arith.constant 4 : index
    %c0_28 = arith.constant 0 : index
    %c0_29 = arith.constant 0 : index
    %31 = vector.load %arg2[%c4, %c0_28, %c0_29] : memref<9x8x4xbf16, #tpu.memory_space<vmem>>, vector<1x8x4xbf16>
    %32 = vector.shape_cast %31 : vector<1x8x4xbf16> to vector<8x4xbf16>
    %cst_30 = arith.constant dense<0.000000e+00> : vector<8x288xf32>
    %33 = tpu.matmul %32, %30, %cst_30 {dimension_numbers = #tpu.dot_dimension_numbers<[1], [0], [0], [1], [0, 0, 1, 1], [], []>} : vector<8x4xbf16>, vector<4x288xbf16>, vector<8x288xf32> -> vector<8x288xf32>
    %34 = arith.addf %28, %33 : vector<8x288xf32>
    %c0_31 = arith.constant 0 : index
    %c0_32 = arith.constant 0 : index
    %c20 = arith.constant 20 : index
    %35 = vector.load %arg1[%c0_31, %c0_32, %c20] : memref<1x4x326xbf16, #tpu.memory_space<vmem>>, vector<1x4x288xbf16>
    %36 = vector.shape_cast %35 : vector<1x4x288xbf16> to vector<4x288xbf16>
    %c5 = arith.constant 5 : index
    %c0_33 = arith.constant 0 : index
    %c0_34 = arith.constant 0 : index
    %37 = vector.load %arg2[%c5, %c0_33, %c0_34] : memref<9x8x4xbf16, #tpu.memory_space<vmem>>, vector<1x8x4xbf16>
    %38 = vector.shape_cast %37 : vector<1x8x4xbf16> to vector<8x4xbf16>
    %cst_35 = arith.constant dense<0.000000e+00> : vector<8x288xf32>
    %39 = tpu.matmul %38, %36, %cst_35 {dimension_numbers = #tpu.dot_dimension_numbers<[1], [0], [0], [1], [0, 0, 1, 1], [], []>} : vector<8x4xbf16>, vector<4x288xbf16>, vector<8x288xf32> -> vector<8x288xf32>
    %40 = arith.addf %34, %39 : vector<8x288xf32>
    %c0_36 = arith.constant 0 : index
    %c0_37 = arith.constant 0 : index
    %c36 = arith.constant 36 : index
    %41 = vector.load %arg1[%c0_36, %c0_37, %c36] : memref<1x4x326xbf16, #tpu.memory_space<vmem>>, vector<1x4x288xbf16>
    %42 = vector.shape_cast %41 : vector<1x4x288xbf16> to vector<4x288xbf16>
    %c6 = arith.constant 6 : index
    %c0_38 = arith.constant 0 : index
    %c0_39 = arith.constant 0 : index
    %43 = vector.load %arg2[%c6, %c0_38, %c0_39] : memref<9x8x4xbf16, #tpu.memory_space<vmem>>, vector<1x8x4xbf16>
    %44 = vector.shape_cast %43 : vector<1x8x4xbf16> to vector<8x4xbf16>
    %cst_40 = arith.constant dense<0.000000e+00> : vector<8x288xf32>
    %45 = tpu.matmul %44, %42, %cst_40 {dimension_numbers = #tpu.dot_dimension_numbers<[1], [0], [0], [1], [0, 0, 1, 1], [], []>} : vector<8x4xbf16>, vector<4x288xbf16>, vector<8x288xf32> -> vector<8x288xf32>
    %46 = arith.addf %40, %45 : vector<8x288xf32>
    %c0_41 = arith.constant 0 : index
    %c0_42 = arith.constant 0 : index
    %c37 = arith.constant 37 : index
    %47 = vector.load %arg1[%c0_41, %c0_42, %c37] : memref<1x4x326xbf16, #tpu.memory_space<vmem>>, vector<1x4x288xbf16>
    %48 = vector.shape_cast %47 : vector<1x4x288xbf16> to vector<4x288xbf16>
    %c7 = arith.constant 7 : index
    %c0_43 = arith.constant 0 : index
    %c0_44 = arith.constant 0 : index
    %49 = vector.load %arg2[%c7, %c0_43, %c0_44] : memref<9x8x4xbf16, #tpu.memory_space<vmem>>, vector<1x8x4xbf16>
    %50 = vector.shape_cast %49 : vector<1x8x4xbf16> to vector<8x4xbf16>
    %cst_45 = arith.constant dense<0.000000e+00> : vector<8x288xf32>
    %51 = tpu.matmul %50, %48, %cst_45 {dimension_numbers = #tpu.dot_dimension_numbers<[1], [0], [0], [1], [0, 0, 1, 1], [], []>} : vector<8x4xbf16>, vector<4x288xbf16>, vector<8x288xf32> -> vector<8x288xf32>
    %52 = arith.addf %46, %51 : vector<8x288xf32>
    %c0_46 = arith.constant 0 : index
    %c0_47 = arith.constant 0 : index
    %c38 = arith.constant 38 : index
    %53 = vector.load %arg1[%c0_46, %c0_47, %c38] : memref<1x4x326xbf16, #tpu.memory_space<vmem>>, vector<1x4x288xbf16>
    %54 = vector.shape_cast %53 : vector<1x4x288xbf16> to vector<4x288xbf16>
    %c8 = arith.constant 8 : index
    %c0_48 = arith.constant 0 : index
    %c0_49 = arith.constant 0 : index
    %55 = vector.load %arg2[%c8, %c0_48, %c0_49] : memref<9x8x4xbf16, #tpu.memory_space<vmem>>, vector<1x8x4xbf16>
    %56 = vector.shape_cast %55 : vector<1x8x4xbf16> to vector<8x4xbf16>
    %cst_50 = arith.constant dense<0.000000e+00> : vector<8x288xf32>
    %57 = tpu.matmul %56, %54, %cst_50 {dimension_numbers = #tpu.dot_dimension_numbers<[1], [0], [0], [1], [0, 0, 1, 1], [], []>} : vector<8x4xbf16>, vector<4x288xbf16>, vector<8x288xf32> -> vector<8x288xf32>
    %58 = arith.addf %52, %57 : vector<8x288xf32>
    %59 = vector.broadcast %0 : vector<1x288xf32> to vector<8x288xf32>
    %60 = arith.mulf %58, %59 : vector<8x288xf32>
    %cst_51 = arith.constant 0.000000e+00 : f32
    %61 = vector.broadcast %cst_51 : f32 to vector<8x1xf32>
    %cst_52 = arith.constant 0.000000e+00 : f32
    %62 = vector.broadcast %cst_52 : f32 to vector<8x1xf32>
    %63 = vector.extract_strided_slice %58 {offsets = [0, 0], sizes = [4, 288], strides = [1, 1]} : vector<8x288xf32> to vector<4x288xf32>
    %64 = vector.extract_strided_slice %60 {offsets = [0, 0], sizes = [4, 288], strides = [1, 1]} : vector<8x288xf32> to vector<4x288xf32>
    %cst_53 = arith.constant dense<0.000000e+00> : vector<4xf32>
    %65 = vector.multi_reduction <add>, %64, %cst_53 [1] : vector<4x288xf32> to vector<4xf32>
    %66 = vector.shape_cast %65 : vector<4xf32> to vector<4x1xf32>
    %cst_54 = arith.constant dense<0.000000e+00> : vector<1xf32>
    %67 = vector.multi_reduction <add>, %66, %cst_54 [0] : vector<4x1xf32> to vector<1xf32>
    %68 = vector.shape_cast %67 : vector<1xf32> to vector<1x1xf32>
    %cst_55 = arith.constant 9.765625E-4 : f32
    %69 = vector.broadcast %cst_55 : f32 to vector<1x1xf32>
    %70 = arith.mulf %68, %69 : vector<1x1xf32>
    %71 = vector.broadcast %70 : vector<1x1xf32> to vector<4x288xf32>
    %72 = arith.subf %63, %71 : vector<4x288xf32>
    %73 = vector.broadcast %0 : vector<1x288xf32> to vector<4x288xf32>
    %74 = arith.mulf %72, %73 : vector<4x288xf32>
    %75 = arith.mulf %74, %74 : vector<4x288xf32>
    %cst_56 = arith.constant dense<0.000000e+00> : vector<4xf32>
    %76 = vector.multi_reduction <add>, %75, %cst_56 [1] : vector<4x288xf32> to vector<4xf32>
    %77 = vector.shape_cast %76 : vector<4xf32> to vector<4x1xf32>
    %cst_57 = arith.constant dense<0.000000e+00> : vector<1xf32>
    %78 = vector.multi_reduction <add>, %77, %cst_57 [0] : vector<4x1xf32> to vector<1xf32>
    %79 = vector.shape_cast %78 : vector<1xf32> to vector<1x1xf32>
    %cst_58 = arith.constant 9.765625E-4 : f32
    %80 = vector.broadcast %cst_58 : f32 to vector<1x1xf32>
    %81 = arith.mulf %79, %80 : vector<1x1xf32>
    %cst_59 = arith.constant 9.99999974E-6 : f32
    %82 = vector.broadcast %cst_59 : f32 to vector<1x1xf32>
    %83 = arith.addf %81, %82 : vector<1x1xf32>
    %84 = math.rsqrt %83 : vector<1x1xf32>
    %c0_i32 = arith.constant 0 : i32
    %85 = vector.broadcast %c0_i32 : i32 to vector<8x1xi32>
    %86 = arith.cmpi sge, %1, %85 : vector<8x1xi32>
    %c4_i32 = arith.constant 4 : i32
    %87 = vector.broadcast %c4_i32 : i32 to vector<8x1xi32>
    %88 = arith.cmpi slt, %1, %87 : vector<8x1xi32>
    %89 = arith.andi %86, %88 : vector<8x1xi1>
    %90 = vector.shape_cast %84 : vector<1x1xf32> to vector<1x1xf32>
    %91 = vector.broadcast %90 : vector<1x1xf32> to vector<8x1xf32>
    %92 = arith.select %89, %91, %61 : vector<8x1xi1>, vector<8x1xf32>
    %cst_60 = arith.constant 0.000000e+00 : f32
    %93 = vector.broadcast %cst_60 : f32 to vector<1x1xf32>
    %94 = arith.subf %93, %70 : vector<1x1xf32>
    %95 = arith.mulf %94, %84 : vector<1x1xf32>
    %96 = vector.shape_cast %95 : vector<1x1xf32> to vector<1x1xf32>
    %97 = vector.broadcast %96 : vector<1x1xf32> to vector<8x1xf32>
    %98 = arith.select %89, %97, %62 : vector<8x1xi1>, vector<8x1xf32>
    %99 = vector.extract_strided_slice %58 {offsets = [4, 0], sizes = [4, 288], strides = [1, 1]} : vector<8x288xf32> to vector<4x288xf32>
    %100 = vector.extract_strided_slice %60 {offsets = [4, 0], sizes = [4, 288], strides = [1, 1]} : vector<8x288xf32> to vector<4x288xf32>
    %cst_61 = arith.constant dense<0.000000e+00> : vector<4xf32>
    %101 = vector.multi_reduction <add>, %100, %cst_61 [1] : vector<4x288xf32> to vector<4xf32>
    %102 = vector.shape_cast %101 : vector<4xf32> to vector<4x1xf32>
    %cst_62 = arith.constant dense<0.000000e+00> : vector<1xf32>
    %103 = vector.multi_reduction <add>, %102, %cst_62 [0] : vector<4x1xf32> to vector<1xf32>
    %104 = vector.shape_cast %103 : vector<1xf32> to vector<1x1xf32>
    %cst_63 = arith.constant 9.765625E-4 : f32
    %105 = vector.broadcast %cst_63 : f32 to vector<1x1xf32>
    %106 = arith.mulf %104, %105 : vector<1x1xf32>
    %107 = vector.broadcast %106 : vector<1x1xf32> to vector<4x288xf32>
    %108 = arith.subf %99, %107 : vector<4x288xf32>
    %109 = vector.broadcast %0 : vector<1x288xf32> to vector<4x288xf32>
    %110 = arith.mulf %108, %109 : vector<4x288xf32>
    %111 = arith.mulf %110, %110 : vector<4x288xf32>
    %cst_64 = arith.constant dense<0.000000e+00> : vector<4xf32>
    %112 = vector.multi_reduction <add>, %111, %cst_64 [1] : vector<4x288xf32> to vector<4xf32>
    %113 = vector.shape_cast %112 : vector<4xf32> to vector<4x1xf32>
    %cst_65 = arith.constant dense<0.000000e+00> : vector<1xf32>
    %114 = vector.multi_reduction <add>, %113, %cst_65 [0] : vector<4x1xf32> to vector<1xf32>
    %115 = vector.shape_cast %114 : vector<1xf32> to vector<1x1xf32>
    %cst_66 = arith.constant 9.765625E-4 : f32
    %116 = vector.broadcast %cst_66 : f32 to vector<1x1xf32>
    %117 = arith.mulf %115, %116 : vector<1x1xf32>
    %cst_67 = arith.constant 9.99999974E-6 : f32
    %118 = vector.broadcast %cst_67 : f32 to vector<1x1xf32>
    %119 = arith.addf %117, %118 : vector<1x1xf32>
    %120 = math.rsqrt %119 : vector<1x1xf32>
    %c4_i32_68 = arith.constant 4 : i32
    %121 = vector.broadcast %c4_i32_68 : i32 to vector<8x1xi32>
    %122 = arith.cmpi sge, %1, %121 : vector<8x1xi32>
    %c8_i32 = arith.constant 8 : i32
    %123 = vector.broadcast %c8_i32 : i32 to vector<8x1xi32>
    %124 = arith.cmpi slt, %1, %123 : vector<8x1xi32>
    %125 = arith.andi %122, %124 : vector<8x1xi1>
    %126 = vector.shape_cast %120 : vector<1x1xf32> to vector<1x1xf32>
    %127 = vector.broadcast %126 : vector<1x1xf32> to vector<8x1xf32>
    %128 = arith.select %125, %127, %92 : vector<8x1xi1>, vector<8x1xf32>
    %cst_69 = arith.constant 0.000000e+00 : f32
    %129 = vector.broadcast %cst_69 : f32 to vector<1x1xf32>
    %130 = arith.subf %129, %106 : vector<1x1xf32>
    %131 = arith.mulf %130, %120 : vector<1x1xf32>
    %132 = vector.shape_cast %131 : vector<1x1xf32> to vector<1x1xf32>
    %133 = vector.broadcast %132 : vector<1x1xf32> to vector<8x1xf32>
    %134 = arith.select %125, %133, %98 : vector<8x1xi1>, vector<8x1xf32>
    %c0_70 = arith.constant 0 : index
    %c0_71 = arith.constant 0 : index
    %135 = vector.load %arg5[%c0_70, %c0_71] : memref<8x1xf32, #tpu.memory_space<vmem>>, vector<8x1xf32>
    %136 = arith.mulf %128, %135 : vector<8x1xf32>
    %137 = vector.broadcast %136 : vector<8x1xf32> to vector<8x288xf32>
    %138 = arith.mulf %58, %137 : vector<8x288xf32>
    %c0_72 = arith.constant 0 : index
    %c0_73 = arith.constant 0 : index
    %139 = vector.load %arg5[%c0_72, %c0_73] : memref<8x1xf32, #tpu.memory_space<vmem>>, vector<8x1xf32>
    %140 = arith.mulf %134, %139 : vector<8x1xf32>
    %c0_74 = arith.constant 0 : index
    %c0_75 = arith.constant 0 : index
    %141 = vector.load %arg6[%c0_74, %c0_75] : memref<8x1xf32, #tpu.memory_space<vmem>>, vector<8x1xf32>
    %142 = arith.addf %140, %141 : vector<8x1xf32>
    %143 = vector.broadcast %142 : vector<8x1xf32> to vector<8x288xf32>
    %144 = arith.addf %138, %143 : vector<8x288xf32>
    %cst_76 = arith.constant 0.000000e+00 : f32
    %145 = vector.broadcast %cst_76 : f32 to vector<8x288xf32>
    %146 = arith.subf %145, %144 : vector<8x288xf32>
    %147 = math.exp %146 : vector<8x288xf32>
    %cst_77 = arith.constant 1.000000e+00 : f32
    %148 = vector.broadcast %cst_77 : f32 to vector<8x288xf32>
    %149 = arith.addf %148, %147 : vector<8x288xf32>
    %150 = tpu.reciprocal %149 {approx = true} : vector<8x288xf32> -> vector<8x288xf32>
    %151 = arith.mulf %144, %150 : vector<8x288xf32>
    %c0_78 = arith.constant 0 : index
    %c0_79 = arith.constant 0 : index
    %c0_80 = arith.constant 0 : index
    %152 = vector.load %arg7[%c0_78, %c0_79, %c0_80] : memref<1x8x288xf32, #tpu.memory_space<vmem>>, vector<1x8x288xf32>
    %153 = vector.shape_cast %152 : vector<1x8x288xf32> to vector<8x288xf32>
    %154 = vector.shape_cast %151 : vector<8x288xf32> to vector<1x8x288xf32>
    tpu.vector_store %arg7[%c0_78, %c0_79, %c0_80], %154 {strides = array<i32>} : memref<1x8x288xf32, #tpu.memory_space<vmem>>, vector<1x8x288xf32>,
    return
  }
  func.func @transform_0(%arg0: i32) -> (i32, i32, i32) {
    %c0_i32 = arith.constant 0 : i32
    %c0_i32_0 = arith.constant 0 : i32
    %c0_i32_1 = arith.constant 0 : i32
    return %arg0, %c0_i32, %c0_i32_0 : i32, i32, i32
  }
  func.func @transform_1(%arg0: i32) -> (i32, i32, i32) {
    %c0_i32 = arith.constant 0 : i32
    %c0_i32_0 = arith.constant 0 : i32
    %c0_i32_1 = arith.constant 0 : i32
    %c0_i32_2 = arith.constant 0 : i32
    return %c0_i32, %c0_i32_0, %c0_i32_1 : i32, i32, i32
  }
  func.func @transform_2(%arg0: i32) -> (i32, i32) {
    %c0_i32 = arith.constant 0 : i32
    %c0_i32_0 = arith.constant 0 : i32
    %c0_i32_1 = arith.constant 0 : i32
    return %c0_i32, %c0_i32_0 : i32, i32
  }
  func.func @transform_3(%arg0: i32) -> (i32, i32) {
    %c0_i32 = arith.constant 0 : i32
    %c0_i32_0 = arith.constant 0 : i32
    %c0_i32_1 = arith.constant 0 : i32
    return %c0_i32, %c0_i32_0 : i32, i32
  }
  func.func @transform_4(%arg0: i32) -> (i32, i32) {
    %c0_i32 = arith.constant 0 : i32
    %c0_i32_0 = arith.constant 0 : i32
    %c0_i32_1 = arith.constant 0 : i32
    return %c0_i32, %c0_i32_0 : i32, i32
  }
  func.func @transform_5(%arg0: i32) -> (i32, i32) {
    %c0_i32 = arith.constant 0 : i32
    %c0_i32_0 = arith.constant 0 : i32
    %c0_i32_1 = arith.constant 0 : i32
    return %c0_i32, %c0_i32_0 : i32, i32
  }
  func.func @transform_6(%arg0: i32) -> (i32, i32, i32) {
    %c0_i32 = arith.constant 0 : i32
    %c0_i32_0 = arith.constant 0 : i32
    %c0_i32_1 = arith.constant 0 : i32
    return %arg0, %c0_i32, %c0_i32_0 : i32, i32, i32
  }
}

</mosaic_0001>

<bundles_post_ra>
// kernel: tpu_custom_call.1
= control target key start
LH: loop header
LB: loop body
LE: loop exit
PB: predicated region body
PF: predicated region fallthrough
CT: control target
= control target key end

     0   :  { %11 = vsyncpa [#allocation3], 0  ;;  %s1630_s0 = inlined_call_operand.vmem [shape: bf16[2,4,326], index: 0, kind: input, shape index: {}]   ;;  %s1631_s1 = inlined_call_operand.vmem [shape: bf16[9,8,4], index: 1, kind: input, shape index: {}]   ;;  %s1632_s2 = inlined_call_operand.vmem [shape: f32[8,1], index: 2, kind: input, shape index: {}]   ;;  %s1633_s3 = inlined_call_operand.vmem [shape: f32[1,288], index: 3, kind: input, shape index: {}]   ;;  %s1634_s4 = inlined_call_operand.vmem [shape: f32[8,1], index: 4, kind: input, shape index: {}]   ;;  %s1635_s5 = inlined_call_operand.vmem [shape: f32[8,1], index: 5, kind: input, shape index: {}]   ;;  %s1636_s6 = inlined_call_operand.hbm [shape: f32[2,8,288], index: 6, kind: output, shape index: {}]  }
   0x1   :  { %13 = vsyncpa [#allocation3 + $0x1], 0  ;;  %s1386_s21 = smov 0   ;;  %s1388_s22 = smov 0  }
   0x2   :  { %s1390_s23 = smov 0   ;;  %s1392_s24 = smov 0  }
   0x3 LB: > { %s1407_s25 = sadd.s32 4294967295, %s1340_s24   ;;  %s1165_s26 = sadd.s32 4294967294, %s1340_s24   ;;  %s1340_s24 = sphi %s1392_s24, %s1642_s24   ;;  %s1336_s23 = sphi %s1390_s23, %s1641_s23   ;;  %s1332_s22 = sphi %s1388_s22, %s1640_s22   ;;  %s1328_s21 = sphi %s1386_s21, %s1639_s21  }
   0x4   : > { %s1411_s27 = sadd.s32 1, %s1340_s24   ;;  %s157_s28 = sadd.s32 1, %s1336_s23 }
   0x5   : > { %s154_s29 = ssub.s32 %s1340_s24, %s1411_s27  ;;  %p167_p0 = scmp.ne.s32.totalorder %s1336_s23, %s1332_s22 }
   0x6   : > { %p155_p1 = scmp.eq.s32.totalorder %s154_s29, 0  ;;  %p168_p2 = scmp.eq.s32.totalorder %s1407_s25, 1 }
   0x7   : > { %p173_p3 = scmp.ne.s32.totalorder %s1332_s22, %s1328_s21  ;;  %p174_p4 = scmp.eq.s32.totalorder %s1165_s26, 1 }
   0x8   : > { %s1422_s30 = scalar_select %p155_p1, %s1336_s23, %s157_s28  }
   0x9   : > { %p1424_p5 = por %p168_p2, %p167_p0  ;;  %p1428_p6 = por %p174_p4, %p173_p3 }
   0xa   : > { %p1168_p7 = scmp.ge.s32.totalorder %s1340_s24, 1  ;;  %p215_p8 = scmp.lt.s32.totalorder %s1340_s24, 3 }
   0xc   : > { %p216_p9 = pnand %p1168_p7, %p215_p8 }
   0xd   : > { %p245_p10 = scmp.lt.s32.totalorder (!%p216_p9), %s1407_s25, 1  ;;  %s1342_s14 = smov (!%p216_p9), 127  }
   0xe   : > { %219 = sbr.rel (%p216_p9) target bundleno = 845 (0x34d), region = 44  ;;  %s1343_s15 = smov (!%p216_p9), 126  }
   0xf   : > { %s1344_s16 = smov (!%p216_p9), 110   ;;  %s1345_s17 = smov (!%p216_p9), 109  }
  0x10   : > { %s1346_s20 = smov (!%p216_p9), 108   ;;  %s1347_s26 = smov (!%p216_p9), 92  }
  0x11   : > { %s1348_s28 = smov (!%p216_p9), 91   ;;  %s1349_s29 = smov (!%p216_p9), 90  }
  0x12   : > { %s242_s18 = sand.u32 (!%p216_p9), 1, %s1332_s22  }
  0x13   : > { %s246_s9 = scalar_select %p245_p10, %s1407_s25, 1  ;;  %vm271_vm0 = vcmask 1041408   ;;  %v261_v25 = vld [vmem:[%s1631_s1] sm:$0xf]  ;;  %vm267_vm1 = vcmask 31744   ;;  %v1350_v43 = vmov 0  }
  0x14   : > { %v1173_v42 = vld [vmem:[%s1631_s1 + $0x4] sm:$0xf]  ;;  %1259 = vset.pattern.permute.xlu0 %v1350_v43  ;;  %1260 = vset.pattern.permute.xlu1 %v1350_v43  ;;  %vm337_vm2 = vcmask 1039360   ;;  %vm411_vm3 = vcmask 1031168   ;;  %vm485_vm4 = vcmask 900096   ;;  %vm559_vm5 = vcmask 891904  }
  0x15   : > { %s1209_s10 = smul.u32 6, %s246_s9  ;;  %v254_v44 = vld [vmem:[%s1632_s2] sm:$0xff]  ;;  %1261 = vset.pattern.permute.xlu2 %v1350_v43  ;;  %v1177_v62 = vld [vmem:[%s1631_s1 + $0x8] sm:$0xf]  ;;  %vm633_vm6 = vcmask 883712   ;;  %vm707_vm7 = vcmask 752640  }
  0x16   : > { %vm781_vm8 = vcmask 744448   ;;  %vm855_vm9 = vcmask 736256   ;;  %vm981_vm10 = vcmask 1047556   ;;  %vm922_vm11 = vcmask 1043456   ;;  %s1208_s19 = smul.u32 24, %s242_s18 }
  0x17   : > { %s1439_s13 = scalar_lea.vmem %s1630_s0, %s1209_s10  ;;  %vm985_vm12 = vcmask 261124   ;;  %vm926_vm13 = vcmask 257024  }
  0x18   : > { %v260_v0 = vld [vmem:[%s1439_s13] sm:$0x3f]  ;;  %s244_s9 = scalar_lea.vmem [#allocation2], %s1208_s19 }
  0x19   : > { %263 = vst [vmem:[#allocation1] ss:$4 sm:$0xff] %v260_v0  ;;  %v320_v1 = vld [vmem:[%s1439_s13] sm:$0x3f]  ;;  %v1181_v0 = vld [vmem:[%s1631_s1 + $0xc] sm:$0xf] }
  0x1a   : > { %v394_v5 = vld [vmem:[%s1439_s13] sm:$0x3f]  ;;  %s1103_s10 = sshll.u32 %s244_s9, 4  ;;  %s1104_s10 = int_to_ptr.vmem [resolvable:$true] %s1103_s10 }
  0x1b   : > { %v468_v9 = vld [vmem:[%s1439_s13] sm:$0x3f] }
  0x1c   : > { %v542_v13 = vld [vmem:[%s1439_s13] sm:$0x3f] }
  0x1d   : > { %v616_v17 = vld [vmem:[%s1439_s13] sm:$0x3f] }
  0x1e   : > { %v690_v21 = vld [vmem:[%s1439_s13] sm:$0x3f] }
  0x1f   : > { %v764_v28 = vld [vmem:[%s1439_s13] sm:$0x3f] }
  0x20   : > { %v264_v2 = vld.sshfl [vmem:[#allocation1] sm:$0xff pattern:$0x73625140]  ;;  %v265_v3 = vld.sshfl [vmem:[#allocation1 + $0x8] sm:$0xff pattern:$0x73625140] }
  0x21   : > { %v1443_v4 = vld.sshfl [vmem:[#allocation1 + $0x10] sm:$0xff pattern:$0x73625140]  ;;  %v272_v22 = vsel %vm271_vm0, %v264_v2, 0  ;;  %v274_v23 = vsel %vm271_vm0, %v265_v3, 0 }
  0x22   : > { %324 = vst [vmem:[#allocation1] ss:$4 sm:$0xff] %v320_v1  ;;  %285 = vmatpush.bf16.msra.mxu0 %v272_v22  ;;  %298 = vmatpush.bf16.msra.mxu1 %v274_v23  ;;  %v838_v32 = vld [vmem:[%s1439_s13] sm:$0x3f]  ;;  %v276_v39 = vsel %vm271_vm0, %v1443_v4, 0 }
  0x23   : > { %311 = vmatpush.bf16.msra.mxu2 %v276_v39 }
  0x25   : > { %1171 = vmatmul.msk.bf16.vlgmr.msra.gmra.mxu1 %vm267_vm1, %v261_v25  ;;  %1170 = vmatmul.msk.bf16.vlgmr.msra.gmra.mxu0 %vm267_vm1, %v261_v25 }
  0x26   : > { %1172 = vmatmul.msk.bf16.vlgmr.msra.gmra.mxu2 %vm267_vm1, %v261_v25 }
  0x29   : > { %v325_v6 = vld.sshfl [vmem:[#allocation1] sm:$0xff pattern:$0x73625140]  ;;  %v327_v7 = vld.sshfl [vmem:[#allocation1 + $0x8] sm:$0xff pattern:$0x73625140] }
  0x2a   : > { %331 = vrot.lane.b32.xlu0 %v325_v6, %s1342_s14  ;;  %v329_v8 = vld.sshfl [vmem:[#allocation1 + $0x10] sm:$0xff pattern:$0x73625140] }
  0x2b   : > { %398 = vst [vmem:[#allocation1] ss:$4 sm:$0xff] %v394_v5  ;;  %335 = vrot.lane.b32.xlu2 %v329_v8, %s1342_s14 }
  0x32   : > { %333 = vrot.lane.b32.xlu0 %v327_v7, %s1342_s14  ;;  %v403_v10 = vld.sshfl [vmem:[#allocation1 + $0x10] sm:$0xff pattern:$0x73625140]  ;;  %v399_v11 = vld.sshfl [vmem:[#allocation1] sm:$0xff pattern:$0x73625140] }
  0x33   : > { %405 = vrot.lane.b32.xlu1 %v399_v11, %s1343_s15  ;;  %v401_v12 = vld.sshfl [vmem:[#allocation1 + $0x8] sm:$0xff pattern:$0x73625140]  ;;  %409 = vrot.lane.b32.xlu2 %v403_v10, %s1343_s15 }
  0x34   : > { %472 = vst [vmem:[#allocation1] ss:$4 sm:$0xff] %v468_v9 }
  0x3b   : > { %407 = vrot.lane.b32.xlu1 %v401_v12, %s1343_s15  ;;  %v475_v14 = vld.sshfl [vmem:[#allocation1 + $0x8] sm:$0xff pattern:$0x73625140]  ;;  %v473_v15 = vld.sshfl [vmem:[#allocation1] sm:$0xff pattern:$0x73625140] }
  0x3c   : > { %481 = vrot.lane.b32.xlu0 %v475_v14, %s1344_s16  ;;  %v477_v16 = vld.sshfl [vmem:[#allocation1 + $0x10] sm:$0xff pattern:$0x73625140]  ;;  %479 = vrot.lane.b32.xlu2 %v473_v15, %s1344_s16 }
  0x3d   : > { %546 = vst [vmem:[#allocation1] ss:$4 sm:$0xff] %v542_v13  ;;  %v1185_v14 = vld [vmem:[%s1631_s1 + $0x10] sm:$0xf] }
  0x43   : > { %483 = vrot.lane.b32.xlu1 %v477_v16, %s1344_s16  ;;  %s1298_s16 = scalar_lea.hbm %s1636_s6, 48 }
  0x44   : > { %v551_v18 = vld.sshfl [vmem:[#allocation1 + $0x10] sm:$0xff pattern:$0x73625140]  ;;  %v549_v19 = vld.sshfl [vmem:[#allocation1 + $0x8] sm:$0xff pattern:$0x73625140] }
  0x45   : > { %557 = vrot.lane.b32.xlu0 %v551_v18, %s1345_s17  ;;  %v547_v20 = vld.sshfl [vmem:[#allocation1] sm:$0xff pattern:$0x73625140]  ;;  %555 = vrot.lane.b32.xlu2 %v549_v19, %s1345_s17 }
  0x46   : > { %620 = vst [vmem:[#allocation1] ss:$4 sm:$0xff] %v616_v17 }
  0x4b   : > { %553 = vrot.lane.b32.xlu1 %v547_v20, %s1345_s17 }
  0x4d   : > { %v625_v24 = vld.sshfl [vmem:[#allocation1 + $0x10] sm:$0xff pattern:$0x73625140]  ;;  %v623_v26 = vld.sshfl [vmem:[#allocation1 + $0x8] sm:$0xff pattern:$0x73625140] }
  0x4e   : > { %v621_v27 = vld.sshfl [vmem:[#allocation1] sm:$0xff pattern:$0x73625140] }
  0x4f   : > { %627 = vrot.lane.b32.xlu0 %v621_v27, %s1346_s20  ;;  %694 = vst [vmem:[#allocation1] ss:$4 sm:$0xff] %v690_v21 }
  0x53   : > { %629 = vrot.lane.b32.xlu1 %v623_v26, %s1346_s20 }
  0x56   : > { %v697_v29 = vld.sshfl [vmem:[#allocation1 + $0x8] sm:$0xff pattern:$0x73625140]  ;;  %v699_v30 = vld.sshfl [vmem:[#allocation1 + $0x10] sm:$0xff pattern:$0x73625140] }
  0x57   : > { %703 = vrot.lane.b32.xlu0 %v697_v29, %s1347_s26  ;;  %v695_v31 = vld.sshfl [vmem:[#allocation1] sm:$0xff pattern:$0x73625140] }
  0x58   : > { %768 = vst [vmem:[#allocation1] ss:$4 sm:$0xff] %v764_v28  ;;  %701 = vrot.lane.b32.xlu2 %v695_v31, %s1347_s26  ;;  %v1189_v31 = vld [vmem:[%s1631_s1 + $0x14] sm:$0xf] }
  0x5b   : > { %631 = vrot.lane.b32.xlu1 %v625_v24, %s1346_s20  ;;  %s1210_s20 = smul.u32 24, %s1407_s25  ;;  %s1090_s25 = scalar_lea.sflag [#allocation3], %s242_s18 }
  0x5f   : > { %v771_v33 = vld.sshfl [vmem:[#allocation1 + $0x8] sm:$0xff pattern:$0x73625140]  ;;  %v769_v34 = vld.sshfl [vmem:[#allocation1] sm:$0xff pattern:$0x73625140] }
  0x60   : > { %777 = vrot.lane.b32.xlu0 %v771_v33, %s1348_s28  ;;  %v773_v35 = vld.sshfl [vmem:[#allocation1 + $0x10] sm:$0xff pattern:$0x73625140]  ;;  %705 = vrot.lane.b32.xlu2 %v699_v30, %s1347_s26 }
  0x61   : > { %842 = vst [vmem:[#allocation1] ss:$4 sm:$0xff] %v838_v32 }
  0x63   : > { %779 = vrot.lane.b32.xlu1 %v773_v35, %s1348_s28 }
  0x68   : > { %v847_v36 = vld.sshfl [vmem:[#allocation1 + $0x10] sm:$0xff pattern:$0x73625140]  ;;  %v843_v37 = vld.sshfl [vmem:[#allocation1] sm:$0xff pattern:$0x73625140]  ;;  %775 = vrot.lane.b32.xlu2 %v769_v34, %s1348_s28 }
  0x69   : > { %853 = vrot.lane.b32.xlu0 %v847_v36, %s1349_s29  ;;  %v845_v38 = vld.sshfl [vmem:[#allocation1 + $0x8] sm:$0xff pattern:$0x73625140] }
  0x6b   : > { %849 = vrot.lane.b32.xlu1 %v843_v37, %s1349_s29 }
  0x70   : > { %851 = vrot.lane.b32.xlu2 %v845_v38, %s1349_s29  ;;  %s1101_s29 = scalar_lea.hbm %s1636_s6, %s1210_s20 }
  0x71   : > { %257 = vperm.xlu0 %1259, %v254_v44   ;;  %s1105_s11 = sshll.u32 %s1101_s29, 4  ;;  %s1106_s11 = int_to_ptr.hbm [resolvable:$true] %s1105_s11 }
  0x72   : > { %s1292_s12 = sshra.s32 %s1106_s11, 4  ;;  %s1293_s12 = int_to_ptr.hbm [resolvable:$true] %s1292_s12 }
  0x73   : > { %s1294_s13 = scalar_lea.hbm %s1293_s12, 24  ;;  %p1299_p0 = scmp.lt.s32.totalorder %s1293_s12, %s1636_s6 }
  0x74   : > { %p1295_p11 = scmp.ne.s32.totalorder %s1293_s12, %s1294_s13  ;;  %p1300_p1 = scmp.lt.s32.totalorder %s1298_s16, %s1294_s13 }
  0x76   : > { %p1296_p12 = pnand %p1295_p11, %p1424_p5  ;;  %p1301_p2 = por %p1300_p1, %p1299_p0 }
  0x78   : > { %p1297_p13 = pneg %p1296_p12 }
  0x7a   : > { %p1302_p3 = pnand %p1301_p2, %p1297_p13 }
  0x85   : > { %v336_v40 = vpop.permute.xlu2 %335 }
  0x86   : > { %v350_v41 = vsel %vm271_vm0, %v336_v40, 0 }
  0x87   : > { %385 = vmatpush.bf16.msrb.mxu1 %v350_v41 }
  0x8a   : > { %1176 = vmatmul.msk.bf16.vlgmr.msrb.gmra.mxu1 %vm267_vm1, %v1173_v42 }
  0x8d   : > { %v410_v46 = vpop.permute.xlu2 %409 }
  0x8e   : > { %v424_v51 = vsel %vm271_vm0, %v410_v46, 0 }
  0x96   : > { %v480_v54 = vpop.permute.xlu2 %479 }
  0x9c   : > { %v332_v45 = vpop.permute.xlu0 %331 }
  0x9f   : > { %v556_v1 = vpop.permute.xlu2 %555 }
  0xa4   : > { %v334_v47 = vpop.permute.xlu0 %333 }
  0xa5   : > { %v406_v48 = vpop.permute.xlu1 %405  ;;  %v338_v49 = vsel %vm337_vm2, %v332_v45, %v334_v47  ;;  %v339_v50 = vsel %vm337_vm2, %v334_v47, %v336_v40  ;;  %v1197_v47 = vld [vmem:[%s1631_s1 + $0x1c] sm:$0xf] }
  0xa6   : > { %v344_v52 = vsel %vm271_vm0, %v338_v49, 0  ;;  %v347_v53 = vsel %vm271_vm0, %v339_v50, 0  ;;  %v287_v49 = vpop.f32.mrf.mxu0  ;;  %v300_v50 = vpop.f32.mrf.mxu1 }
  0xa7   : > { %359 = vmatpush.bf16.msra.mxu3 %v344_v52  ;;  %372 = vmatpush.bf16.msrb.mxu0 %v347_v53  ;;  %v1201_v53 = vld [vmem:[%s1631_s1 + $0x20] sm:$0xf] }
  0xaa   : > { %1174 = vmatmul.msk.bf16.vlgmr.msra.gmra.mxu3 %vm267_vm1, %v1173_v42  ;;  %1175 = vmatmul.msk.bf16.vlgmr.msrb.gmra.mxu0 %vm267_vm1, %v1173_v42 }
  0xab   : > { %459 = vmatpush.bf16.msra.mxu0 %v424_v51 }
  0xad   : > { %v408_v55 = vpop.permute.xlu1 %407 }
  0xae   : > { %v412_v56 = vsel %vm411_vm3, %v406_v48, %v408_v55  ;;  %v413_v57 = vsel %vm411_vm3, %v408_v55, %v410_v46  ;;  %v482_v58 = vpop.permute.xlu0 %481  ;;  %v1193_v46 = vld [vmem:[%s1631_s1 + $0x18] sm:$0xf]  ;;  %v289_v51 = vpop.f32.mrf.mxu0 }
  0xaf   : > { %v418_v59 = vsel %vm271_vm0, %v412_v56, 0  ;;  %v421_v60 = vsel %vm271_vm0, %v413_v57, 0  ;;  %v486_v61 = vsel %vm485_vm4, %v480_v54, %v482_v58  ;;  %v302_v52 = vpop.f32.mrf.mxu1  ;;  %v313_v54 = vpop.f32.mrf.mxu2 }
  0xb0   : > { %433 = vmatpush.bf16.msrb.mxu2 %v418_v59  ;;  %446 = vmatpush.bf16.msrb.mxu3 %v421_v60  ;;  %v492_v63 = vsel %vm271_vm0, %v486_v61, 0 }
  0xb1   : > { %507 = vmatpush.bf16.msra.mxu1 %v492_v63 }
  0xb2   : > { %v702_v10 = vpop.permute.xlu2 %701 }
  0xb3   : > { %1178 = vmatmul.msk.bf16.vlgmr.msrb.gmra.mxu2 %vm267_vm1, %v1177_v62 }
  0xb4   : > { %1182 = vmatmul.msk.bf16.vlgmr.msra.gmra.mxu1 %vm267_vm1, %v1181_v0 }
  0xb5   : > { %v484_v2 = vpop.permute.xlu1 %483 }
  0xb6   : > { %v487_v3 = vsel %vm485_vm4, %v482_v58, %v484_v2  ;;  %v498_v4 = vsel %vm271_vm0, %v484_v2, 0 }
  0xb7   : > { %v495_v5 = vsel %vm271_vm0, %v487_v3, 0  ;;  %533 = vmatpush.bf16.msra.mxu3 %v498_v4  ;;  %v558_v6 = vpop.permute.xlu0 %557  ;;  %v315_v55 = vpop.f32.mrf.mxu2 }
  0xb8   : > { %520 = vmatpush.bf16.msra.mxu2 %v495_v5  ;;  %v572_v7 = vsel %vm271_vm0, %v558_v6, 0  ;;  %v561_v8 = vsel %vm559_vm5, %v556_v1, %v558_v6 }
  0xb9   : > { %v569_v9 = vsel %vm271_vm0, %v561_v8, 0 }
  0xba   : > { %1179 = vmatmul.msk.bf16.vlgmr.msrb.gmra.mxu3 %vm267_vm1, %v1177_v62  ;;  %1180 = vmatmul.msk.bf16.vlgmr.msra.gmra.mxu0 %vm267_vm1, %v1177_v62  ;;  %v706_v18 = vpop.permute.xlu2 %705 }
  0xbb   : > { %594 = vmatpush.bf16.msrb.mxu1 %v569_v9  ;;  %v720_v28 = vsel %vm271_vm0, %v706_v18, 0 }
  0xbc   : > { %607 = vmatpush.bf16.msrb.mxu2 %v572_v7 }
  0xbd   : > { %v554_v11 = vpop.permute.xlu1 %553 }
  0xbe   : > { %v560_v12 = vsel %vm559_vm5, %v554_v11, %v556_v1 }
  0xbf   : > { %v566_v13 = vsel %vm271_vm0, %v560_v12, 0 }
  0xc0   : > { %581 = vmatpush.bf16.msrb.mxu0 %v566_v13 }
  0xc1   : > { %v628_v15 = vpop.permute.xlu0 %627 }
  0xc2   : > { %v776_v30 = vpop.permute.xlu2 %775 }
  0xc3   : > { %1183 = vmatmul.msk.bf16.vlgmr.msra.gmra.mxu2 %vm267_vm1, %v1181_v0 }
  0xc4   : > { %1187 = vmatmul.msk.bf16.vlgmr.msrb.gmra.mxu1 %vm267_vm1, %v1185_v14 }
  0xc5   : > { %v630_v16 = vpop.permute.xlu1 %629 }
  0xc6   : > { %v634_v17 = vsel %vm633_vm6, %v628_v15, %v630_v16 }
  0xc7   : > { %v640_v19 = vsel %vm271_vm0, %v634_v17, 0 }
  0xc8   : > { %655 = vmatpush.bf16.msrb.mxu3 %v640_v19 }
  0xc9   : > { %v704_v20 = vpop.permute.xlu0 %703 }
  0xca   : > { %1184 = vmatmul.msk.bf16.vlgmr.msra.gmra.mxu3 %vm267_vm1, %v1181_v0  ;;  %1186 = vmatmul.msk.bf16.vlgmr.msrb.gmra.mxu0 %vm267_vm1, %v1185_v14  ;;  %v708_v21 = vsel %vm707_vm7, %v702_v10, %v704_v20  ;;  %v709_v22 = vsel %vm707_vm7, %v704_v20, %v706_v18  ;;  %v852_v39 = vpop.permute.xlu2 %851 }
  0xcb   : > { %v714_v23 = vsel %vm271_vm0, %v708_v21, 0  ;;  %v717_v24 = vsel %vm271_vm0, %v709_v22, 0 }
  0xcc   : > { %729 = vmatpush.bf16.msra.mxu2 %v714_v23  ;;  %742 = vmatpush.bf16.msra.mxu3 %v717_v24 }
  0xcd   : > { %v632_v25 = vpop.permute.xlu1 %631 }
  0xce   : > { %v635_v26 = vsel %vm633_vm6, %v630_v16, %v632_v25  ;;  %v646_v27 = vsel %vm271_vm0, %v632_v25, 0  ;;  %vm1087_vm6 = vcmask 261120  }
  0xcf   : > { %v643_v29 = vsel %vm271_vm0, %v635_v26, 0  ;;  %681 = vmatpush.bf16.msra.mxu1 %v646_v27 }
  0xd0   : > { %668 = vmatpush.bf16.msra.mxu0 %v643_v29 }
  0xd2   : > { %v778_v32 = vpop.permute.xlu0 %777 }
  0xd3   : > { %1188 = vmatmul.msk.bf16.vlgmr.msrb.gmra.mxu2 %vm267_vm1, %v1185_v14  ;;  %v782_v33 = vsel %vm781_vm8, %v776_v30, %v778_v32 }
  0xd4   : > { %755 = vmatpush.bf16.msrb.mxu0 %v720_v28  ;;  %1192 = vmatmul.msk.bf16.vlgmr.msra.gmra.mxu1 %vm267_vm1, %v1189_v31  ;;  %v788_v34 = vsel %vm271_vm0, %v782_v33, 0 }
  0xd5   : > { %803 = vmatpush.bf16.msrb.mxu1 %v788_v34  ;;  %v780_v35 = vpop.permute.xlu1 %779 }
  0xd6   : > { %v783_v36 = vsel %vm781_vm8, %v778_v32, %v780_v35  ;;  %v794_v38 = vsel %vm271_vm0, %v780_v35, 0 }
  0xd7   : > { %v791_v37 = vsel %vm271_vm0, %v783_v36, 0 }
  0xd8   : > { %816 = vmatpush.bf16.msrb.mxu2 %v791_v37 }
  0xda   : > { %1190 = vmatmul.msk.bf16.vlgmr.msrb.gmra.mxu3 %vm267_vm1, %v1189_v31  ;;  %1191 = vmatmul.msk.bf16.vlgmr.msra.gmra.mxu0 %vm267_vm1, %v1189_v31 }
  0xdb   : > { %829 = vmatpush.bf16.msrb.mxu3 %v794_v38  ;;  %v854_v40 = vpop.permute.xlu0 %853 }
  0xdc   : > { %v857_v41 = vsel %vm855_vm9, %v852_v39, %v854_v40  ;;  %v868_v48 = vsel %vm271_vm0, %v854_v40, 0 }
  0xdd   : > { %v865_v42 = vsel %vm271_vm0, %v857_v41, 0  ;;  %v850_v43 = vpop.permute.xlu1 %849 }
  0xde   : > { %v856_v44 = vsel %vm855_vm9, %v850_v43, %v852_v39  ;;  %890 = vmatpush.bf16.msra.mxu1 %v865_v42 }
  0xdf   : > { %v862_v45 = vsel %vm271_vm0, %v856_v44, 0 }
  0xe0   : > { %877 = vmatpush.bf16.msra.mxu0 %v862_v45 }
  0xe3   : > { %1194 = vmatmul.msk.bf16.vlgmr.msra.gmra.mxu2 %vm267_vm1, %v1193_v46  ;;  %v258_v56 = vpop.permute.xlu0 %257 }
  0xe4   : > { %1198 = vmatmul.msk.bf16.vlgmr.msrb.gmra.mxu1 %vm267_vm1, %v1197_v47  ;;  %903 = vmatpush.bf16.msra.mxu2 %v868_v48  ;;  %v319_v57 = vadd.f32 %v313_v54, %v258_v56  ;;  %v318_v61 = vadd.f32 %v300_v50, %v258_v56  ;;  %v317_v0 = vadd.f32 %v287_v49, %v258_v56  ;;  %v251_v54 = vld [vmem:[%s1633_s3] sm:$0x7] }
  0xea   : > { %1195 = vmatmul.msk.bf16.vlgmr.msra.gmra.mxu3 %vm267_vm1, %v1193_v46  ;;  %1196 = vmatmul.msk.bf16.vlgmr.msrb.gmra.mxu0 %vm267_vm1, %v1193_v46 }
  0xf3   : > { %1199 = vmatmul.msk.bf16.vlgmr.msrb.gmra.mxu2 %vm267_vm1, %v1197_v47 }
  0xf4   : > { %1203 = vmatmul.msk.bf16.vlgmr.msra.gmra.mxu1 %vm267_vm1, %v1201_v53 }
  0xfa   : > { %1200 = vmatmul.msk.bf16.vlgmr.msrb.gmra.mxu3 %vm267_vm1, %v1197_v47  ;;  %1202 = vmatmul.msk.bf16.vlgmr.msra.gmra.mxu0 %vm267_vm1, %v1201_v53 }
 0x103   : > { %1204 = vmatmul.msk.bf16.vlgmr.msra.gmra.mxu2 %vm267_vm1, %v1201_v53 }
 0x107   : > { %v387_v58 = vpop.f32.mrf.mxu1 }
 0x108   : > { %v393_v59 = vadd.f32 %v387_v58, %v319_v57 }
 0x10f   : > { %v389_v60 = vpop.f32.mrf.mxu1 }
 0x110   : > { %v913_v60 = vperm.slane %v251_v54, 0 }
 0x127   : > { %v374_v62 = vpop.f32.mrf.mxu0 }
 0x128   : > { %v392_v63 = vadd.f32 %v374_v62, %v318_v61  ;;  %v914_v62 = vperm.slane %v251_v54, 1 }
 0x12d   : > { %v361_v1 = vpop.f32.mrf.mxu3 }
 0x12e   : > { %v391_v2 = vadd.f32 %v361_v1, %v317_v0 }
 0x12f   : > { %v376_v3 = vpop.f32.mrf.mxu0 }
 0x131   : > { %v509_v4 = vpop.f32.mrf.mxu1 }
 0x135   : > { %v363_v5 = vpop.f32.mrf.mxu3 }
 0x136   : > { %v435_v6 = vpop.f32.mrf.mxu2  ;;  %v915_v5 = vperm.slane %v251_v54, 2 }
 0x137   : > { %v465_v7 = vadd.f32 %v435_v6, %v391_v2  ;;  %v461_v8 = vpop.f32.mrf.mxu0 }
 0x138   : > { %v467_v9 = vadd.f32 %v461_v8, %v393_v59 }
 0x139   : > { %v539_v10 = vadd.f32 %v509_v4, %v465_v7  ;;  %v511_v11 = vpop.f32.mrf.mxu1 }
 0x13d   : > { %v448_v12 = vpop.f32.mrf.mxu3 }
 0x13e   : > { %v437_v13 = vpop.f32.mrf.mxu2  ;;  %v466_v38 = vadd.f32 %v448_v12, %v392_v63 }
 0x13f   : > { %v463_v14 = vpop.f32.mrf.mxu0 }
 0x141   : > { %v596_v15 = vpop.f32.mrf.mxu1 }
 0x145   : > { %v450_v16 = vpop.f32.mrf.mxu3 }
 0x146   : > { %v522_v17 = vpop.f32.mrf.mxu2 }
 0x147   : > { %v583_v18 = vpop.f32.mrf.mxu0  ;;  %v540_v40 = vadd.f32 %v522_v17, %v466_v38 }
 0x148   : > { %v613_v42 = vadd.f32 %v583_v18, %v539_v10 }
 0x149   : > { %v598_v19 = vpop.f32.mrf.mxu1  ;;  %v614_v43 = vadd.f32 %v596_v15, %v540_v40 }
 0x14d   : > { %v535_v20 = vpop.f32.mrf.mxu3 }
 0x14e   : > { %v524_v21 = vpop.f32.mrf.mxu2  ;;  %v541_v52 = vadd.f32 %v535_v20, %v467_v9 }
 0x14f   : > { %v585_v22 = vpop.f32.mrf.mxu0 }
 0x151   : > { %v683_v23 = vpop.f32.mrf.mxu1 }
 0x155   : > { %v537_v24 = vpop.f32.mrf.mxu3 }
 0x156   : > { %v609_v25 = vpop.f32.mrf.mxu2 }
 0x157   : > { %v670_v26 = vpop.f32.mrf.mxu0  ;;  %v615_v56 = vadd.f32 %v609_v25, %v541_v52 }
 0x158   : > { %v688_v47 = vadd.f32 %v670_v26, %v614_v43 }
 0x159   : > { %v685_v27 = vpop.f32.mrf.mxu1  ;;  %v689_v0 = vadd.f32 %v683_v23, %v615_v56 }
 0x15d   : > { %v657_v28 = vpop.f32.mrf.mxu3 }
 0x15e   : > { %v611_v29 = vpop.f32.mrf.mxu2  ;;  %v687_v45 = vadd.f32 %v657_v28, %v613_v42 }
 0x15f   : > { %v672_v30 = vpop.f32.mrf.mxu0 }
 0x161   : > { %v805_v31 = vpop.f32.mrf.mxu1 }
 0x165   : > { %v659_v32 = vpop.f32.mrf.mxu3 }
 0x166   : > { %v731_v33 = vpop.f32.mrf.mxu2 }
 0x167   : > { %v757_v34 = vpop.f32.mrf.mxu0  ;;  %v761_v49 = vadd.f32 %v731_v33, %v687_v45 }
 0x168   : > { %v763_v2 = vadd.f32 %v757_v34, %v689_v0 }
 0x169   : > { %v807_v35 = vpop.f32.mrf.mxu1  ;;  %v835_v55 = vadd.f32 %v805_v31, %v761_v49 }
 0x16d   : > { %v744_v36 = vpop.f32.mrf.mxu3 }
 0x16e   : > { %v733_v37 = vpop.f32.mrf.mxu2  ;;  %v762_v50 = vadd.f32 %v744_v36, %v688_v47 }
 0x16f   : > { %v759_v39 = vpop.f32.mrf.mxu0 }
 0x171   : > { %v892_v41 = vpop.f32.mrf.mxu1 }
 0x175   : > { %v746_v44 = vpop.f32.mrf.mxu3 }
 0x176   : > { %v818_v46 = vpop.f32.mrf.mxu2 }
 0x177   : > { %v879_v48 = vpop.f32.mrf.mxu0  ;;  %v836_v53 = vadd.f32 %v818_v46, %v762_v50 }
 0x178   : > { %v1546_v58 = vadd.f32 %v879_v48, %v835_v55 }
 0x179   : > { %v894_v51 = vpop.f32.mrf.mxu1  ;;  %v1548_v61 = vadd.f32 %v892_v41, %v836_v53 }
 0x17a   : > { %v919_v1 = vmul.f32 %v913_v60, %v1546_v58 }
 0x17b   : > { %v920_v3 = vmul.f32 %v914_v62, %v1548_v61 }
 0x17c   : > { %v982_v8 = vsel %vm981_vm10, %v919_v1, 0.0  ;;  %v923_v11 = vsel %vm922_vm11, %v919_v1, 0.0 }
 0x17d   : > { %v831_v57 = vpop.f32.mrf.mxu3  ;;  %v983_v10 = vsel %vm981_vm10, %v920_v3, 0.0  ;;  %v924_v12 = vsel %vm922_vm11, %v920_v3, 0.0 }
 0x17e   : > { %v820_v59 = vpop.f32.mrf.mxu2  ;;  %v837_v4 = vadd.f32 %v831_v57, %v763_v2  ;;  %v984_v14 = vadd.f32 %v983_v10, %v982_v8  ;;  %v925_v15 = vadd.f32 %v924_v12, %v923_v11 }
 0x17f   : > { %v881_v63 = vpop.f32.mrf.mxu0 }
 0x185   : > { %v833_v6 = vpop.f32.mrf.mxu3 }
 0x186   : > { %v905_v7 = vpop.f32.mrf.mxu2 }
 0x187   : > { %v1553_v9 = vadd.f32 %v905_v7, %v837_v4 }
 0x189   : > { %v921_v13 = vmul.f32 %v915_v5, %v1553_v9 }
 0x18b   : > { %v986_v16 = vsel %vm985_vm12, %v921_v13, 0.0  ;;  %v927_v17 = vsel %vm926_vm13, %v921_v13, 0.0 }
 0x18c   : > { %v987_v18 = vadd.f32 %v986_v16, %v984_v14  ;;  %v928_v19 = vadd.f32 %v927_v17, %v925_v15 }
 0x18e   : > { %988 = vadd.xlane.f32.xlu1 %v987_v18  ;;  %929 = vadd.xlane.f32.xlu2 %v928_v19  ;;  %v907_v20 = vpop.f32.mrf.mxu2 }
 0x201   : > { %v989_v21 = vpop.xlane.xlu1 %988  ;;  %v930_v22 = vpop.xlane.xlu2 %929 }
 0x202   : > { %v991_v23 = vrot.slane %v989_v21, 4  ;;  %v931_v24 = vsel %vm922_vm11, %v930_v22, 0.0 }
 0x203   : > { %v932_v25 = vrot.slane %v931_v24, 4 }
 0x204   : > { %v993_v26 = vsel %vm922_vm11, %v991_v23, 0.0 }
 0x205   : > { %v994_v27 = vrot.slane %v993_v26, 4  ;;  %v933_v28 = vadd.f32 %v932_v25, %v931_v24 }
 0x207   : > { %v995_v29 = vadd.f32 %v994_v27, %v993_v26  ;;  %v934_v30 = vrot.slane %v933_v28, 2 }
 0x209   : > { %v996_v31 = vrot.slane %v995_v29, 2  ;;  %v935_v32 = vadd.f32 %v934_v30, %v933_v28 }
 0x20b   : > { %v997_v33 = vadd.f32 %v996_v31, %v995_v29  ;;  %v936_v34 = vrot.slane %v935_v32, 1 }
 0x20d   : > { %v998_v35 = vrot.slane %v997_v33, 1  ;;  %v937_v36 = vadd.f32 %v936_v34, %v935_v32 }
 0x20f   : > { %v999_v37 = vadd.f32 %v998_v35, %v997_v33  ;;  %v1563_v38 = vmul.f32 0.0009765625, %v937_v36  ;;  %v252_v33 = vlaneseq }
 0x211   : > { %v1565_v39 = vmul.f32 0.0009765625, %v999_v37  ;;  %v939_v40 = vsub.f32 %v1546_v58, %v1563_v38  ;;  %v940_v41 = vsub.f32 %v1548_v61, %v1563_v38  ;;  %v941_v42 = vsub.f32 %v1553_v9, %v1563_v38 }
 0x212   : > { %v253_v37 = vshrl.u32 %v252_v33, 7 }
 0x213   : > { %v942_v43 = vmul.f32 %v939_v40, %v913_v60  ;;  %v943_v44 = vmul.f32 %v940_v41, %v914_v62  ;;  %v944_v45 = vmul.f32 %v941_v42, %v915_v5  ;;  %v1001_v46 = vsub.f32 %v1546_v58, %v1565_v39 }
 0x214   : > { %v1002_v47 = vsub.f32 %v1548_v61, %v1565_v39  ;;  %v1003_v48 = vsub.f32 %v1553_v9, %v1565_v39  ;;  %vm975_vm2 = vcmp.lt.s32.totalorder %v253_v37, 4  ;;  %vm1039_vm4 = vcmp.ge.s32.totalorder %v253_v37, 4 }
 0x215   : > { %v945_v49 = vmul.f32 %v942_v43, %v942_v43  ;;  %v946_v50 = vmul.f32 %v943_v44, %v943_v44  ;;  %v947_v51 = vmul.f32 %v944_v45, %v944_v45  ;;  %v1004_v52 = vmul.f32 %v1001_v46, %v913_v60 }
 0x216   : > { %v1005_v53 = vmul.f32 %v1002_v47, %v914_v62  ;;  %v1006_v54 = vmul.f32 %v1003_v48, %v915_v5  ;;  %v978_v43 = vsub.f32 0.0, %v1563_v38  ;;  %v1043_v47 = vsub.f32 0.0, %v1565_v39  ;;  %v1046_v48 = vld [vmem:[%s1634_s4] sm:$0xff] }
 0x217   : > { %v948_v55 = vsel %vm922_vm11, %v945_v49, 0.0  ;;  %v949_v56 = vsel %vm922_vm11, %v946_v50, 0.0  ;;  %v1007_v57 = vmul.f32 %v1004_v52, %v1004_v52  ;;  %v951_v1 = vsel %vm926_vm13, %v947_v51, 0.0 }
 0x218   : > { %v950_v59 = vadd.f32 %v949_v56, %v948_v55  ;;  %v1008_v63 = vmul.f32 %v1005_v53, %v1005_v53  ;;  %v1009_v0 = vmul.f32 %v1006_v54, %v1006_v54  ;;  %v1057_v55 = vld [vmem:[%s1635_s5] sm:$0xff] }
 0x219   : > { %v1010_v2 = vsel %vm981_vm10, %v1007_v57, 0.0 }
 0x21a   : > { %v952_v3 = vadd.f32 %v951_v1, %v950_v59  ;;  %v1011_v4 = vsel %vm981_vm10, %v1008_v63, 0.0  ;;  %v1013_v60 = vsel %vm985_vm12, %v1009_v0, 0.0 }
 0x21b   : > { %v1012_v6 = vadd.f32 %v1011_v4, %v1010_v2 }
 0x21c   : > { %953 = vadd.xlane.f32.xlu2 %v952_v3 }
 0x21d   : > { %v1014_v62 = vadd.f32 %v1013_v60, %v1012_v6 }
 0x21f   : > { %1015 = vadd.xlane.f32.xlu0 %v1014_v62 }
 0x28f   : > { %v954_v5 = vpop.xlane.xlu2 %953 }
 0x290   : > { %v955_v7 = vsel %vm922_vm11, %v954_v5, 0.0 }
 0x291   : > { %v956_v8 = vrot.slane %v955_v7, 4 }
 0x292   : > { %v1016_v10 = vpop.xlane.xlu0 %1015 }
 0x293   : > { %v957_v11 = vadd.f32 %v956_v8, %v955_v7  ;;  %v1018_v12 = vrot.slane %v1016_v10, 4 }
 0x295   : > { %v958_v13 = vrot.slane %v957_v11, 2  ;;  %v1020_v14 = vsel %vm922_vm11, %v1018_v12, 0.0 }
 0x296   : > { %v1021_v15 = vrot.slane %v1020_v14, 4 }
 0x297   : > { %v959_v16 = vadd.f32 %v958_v13, %v957_v11 }
 0x298   : > { %v1022_v17 = vadd.f32 %v1021_v15, %v1020_v14 }
 0x299   : > { %v960_v18 = vrot.slane %v959_v16, 1 }
 0x29a   : > { %v1023_v19 = vrot.slane %v1022_v17, 2 }
 0x29b   : > { %v961_v20 = vadd.f32 %v960_v18, %v959_v16 }
 0x29c   : > { %v1024_v21 = vadd.f32 %v1023_v19, %v1022_v17 }
 0x29d   : > { %v962_v22 = vmul.f32 0.0009765625, %v961_v20 }
 0x29e   : > { %v1025_v23 = vrot.slane %v1024_v21, 1 }
 0x29f   : > { %v963_v24 = vadd.f32 1e-05, %v962_v22 }
 0x2a0   : > { %v1026_v25 = vadd.f32 %v1025_v23, %v1024_v21 }
 0x2a1   : > { %1262 = vrsqrt.f32 %v963_v24  ;;  %vm970_vm15 = vweird.f32 %v963_v24 }
 0x2a2   : > { %v1027_v26 = vmul.f32 0.0009765625, %v1026_v25 }
 0x2a4   : > { %v1028_v27 = vadd.f32 1e-05, %v1027_v26 }
 0x2a6   : > { %1264 = vrsqrt.f32 %v1028_v27  ;;  %vm1035_vm3 = vweird.f32 %v1028_v27 }
 0x2a7   : > { %v1263_v28 = vpop.eup %1262 }
 0x2a8   : > { %v965_v29 = vmul.f32 %v1263_v28, %v963_v24  ;;  %vm971_vm14 = vweird.f32 %v1263_v28 }
 0x2a9   : > { %vm972_vm0 = vmor %vm970_vm15, %vm971_vm14 }
 0x2aa   : > { %v966_v30 = vmul.f32 %v1263_v28, %v965_v29 }
 0x2ac   : > { %v1265_v31 = vpop.eup %1264  ;;  %v967_v32 = vmul.f32 0.5, %v966_v30 }
 0x2ad   : > { %v1030_v34 = vmul.f32 %v1265_v31, %v1028_v27  ;;  %vm1036_vm1 = vweird.f32 %v1265_v31 }
 0x2ae   : > { %v968_v35 = vsub.f32 1.5, %v967_v32  ;;  %vm1037_vm5 = vmor %vm1035_vm3, %vm1036_vm1 }
 0x2af   : > { %v1031_v36 = vmul.f32 %v1265_v31, %v1030_v34 }
 0x2b0   : > { %v969_v40 = vmul.f32 %v1263_v28, %v968_v35 }
 0x2b1   : > { %v1032_v41 = vmul.f32 0.5, %v1031_v36 }
 0x2b2   : > { %v973_v42 = vsel %vm972_vm0, %v1263_v28, %v969_v40 }
 0x2b3   : > { %v1033_v44 = vsub.f32 1.5, %v1032_v41  ;;  %v979_v45 = vmul.f32 %v978_v43, %v973_v42  ;;  %v977_v49 = vsel %vm975_vm2, %v973_v42, 0.0 }
 0x2b5   : > { %v1034_v46 = vmul.f32 %v1265_v31, %v1033_v44  ;;  %v980_v38 = vsel %vm975_vm2, %v979_v45, 0.0 }
 0x2b7   : > { %v1038_v50 = vsel %vm1037_vm5, %v1265_v31, %v1034_v46 }
 0x2b8   : > { %v1042_v51 = vsel %vm1039_vm4, %v1038_v50, %v977_v49  ;;  %v1044_v52 = vmul.f32 %v1043_v47, %v1038_v50 }
 0x2b9   : > { %v1047_v53 = vmul.f32 %v1046_v48, %v1042_v51 }
 0x2ba   : > { %v1045_v54 = vsel %vm1039_vm4, %v1044_v52, %v980_v38 }
 0x2bb   : > { %1050 = vperm.xlu1 %1260, %v1047_v53   ;;  %v1056_v56 = vmul.f32 %v1046_v48, %v1045_v54 }
 0x2bd   : > { %v1058_v57 = vadd.f32 %v1057_v55, %v1056_v56 }
 0x2bf   : > { %1061 = vperm.xlu2 %1261, %v1058_v57  }
 0x319   : > { %v1062_v1 = vpop.permute.xlu2 %1061 }
 0x32d   : > { %v1051_v39 = vpop.permute.xlu1 %1050 }
 0x32e   : > { %v1053_v59 = vmul.f32 %v1051_v39, %v1546_v58  ;;  %v1054_v63 = vmul.f32 %v1051_v39, %v1548_v61  ;;  %v1055_v0 = vmul.f32 %v1051_v39, %v1553_v9 }
 0x330   : > { %v1064_v2 = vadd.f32 %v1062_v1, %v1053_v59  ;;  %v1065_v3 = vadd.f32 %v1062_v1, %v1054_v63  ;;  %v1066_v4 = vadd.f32 %v1062_v1, %v1055_v0 }
 0x332   : > { %v1067_v6 = vsub.f32 0.0, %v1064_v2  ;;  %v1068_v60 = vsub.f32 0.0, %v1065_v3  ;;  %v1069_v62 = vsub.f32 0.0, %v1066_v4 }
 0x334   : > { %v1070_v5 = vmul.f32 1.442695, %v1067_v6  ;;  %v1072_v7 = vmul.f32 1.442695, %v1068_v60  ;;  %v1074_v8 = vmul.f32 1.442695, %v1069_v62 }
 0x336   : > { %1266 = vpow2.f32 %v1070_v5 }
 0x337   : > { %1268 = vpow2.f32 %v1072_v7 }
 0x338   : > { %1270 = vpow2.f32 %v1074_v8 }
 0x33c   : > { %v1267_v58 = vpop.eup %1266 }
 0x33d   : > { %v1269_v10 = vpop.eup %1268  ;;  %v1076_v61 = vadd.f32 1.0, %v1267_v58 }
 0x33e   : > { %v1271_v9 = vpop.eup %1270  ;;  %v1077_v11 = vadd.f32 1.0, %v1269_v10 }
 0x33f   : > { %v1078_v12 = vadd.f32 1.0, %v1271_v9  ;;  %1272 = vrcp.f32 %v1076_v61 }
 0x340   : > { %1274 = vrcp.f32 %v1077_v11 }
 0x341   : > { %1276 = vrcp.f32 %v1078_v12 }
 0x345   : > { %v1273_v13 = vpop.eup %1272 }
 0x346   : > { %v1275_v14 = vpop.eup %1274  ;;  %v1082_v15 = vmul.f32 %v1273_v13, %v1064_v2 }
 0x347   : > { %v1277_v16 = vpop.eup %1276  ;;  %v1083_v17 = vmul.f32 %v1275_v14, %v1065_v3 }
 0x348   : > { %v1084_v18 = vmul.f32 %v1277_v16, %v1066_v4  ;;  %1085 = vst [vmem:[%s244_s9] sm:$0xff] %v1082_v15 }
 0x349   : > { %1086 = vst [vmem:[%s244_s9 + $0x8] sm:$0xff] %v1083_v17 }
 0x34a   : > { %1088 = vst.msk [vmem:[%s244_s9 + $0x10] sm:$0xff] %vm1087_vm6, %v1084_v18 }
 0x34b   : > { %1305 = shalt.err (!%p1302_p3)
}
 0x34c   : > { %1211 = dma.vmem_to_hbm [thread:$0]  (%p1424_p5), %s1104_s10, 384, %s1106_s11, %s1090_s25  }
 0x34d PF: > { %p1217_p4 = scmp.ge.s32.totalorder %s1340_s24, 2  ;;  %s1117_s18 = sand.u32 1, %s1328_s21  }
 0x34e   : > { %s1118_s20 = scalar_lea.sflag [#allocation3], %s1117_s18 }
 0x34f   : > { %p1214_p7 = pnand %p1217_p4, %p1428_p6 }
 0x351   : > { %p1215_p8 = pneg %p1214_p7 }
 0x353   : > { %1323 = dma.done.wait (%p1215_p8), %s1118_s20, 384  }
 0x354   : > { %1325 = vsyncadd (%p1215_p8), %s1118_s20, 4294966912  ;;  %p16_p9 = scmp.ge.s32.totalorder %s1411_s27, 4   ;;  %s1639_s21 = smov %s1332_s22 }
 0x355   : > { %s1640_s22 = smov %s1336_s23  ;;  %s1641_s23 = smov %s1422_s30 }
 0x356   : > { %s1642_s24 = smov %s1411_s27  ;;  %18 = sbr.rel (!%p16_p9) target bundleno = 3 (0x3), region = 87 }
 0x35b   :  { %1124 = vsyncpa [#allocation3], 1 }
 0x35c   :  { %1126 = vsyncpa [#allocation3 + $0x1], 1 }

</bundles_post_ra>
